<compile_context>
chip_gen: v6e
topology: v6e:2x2x1
jax: 0.10.0
libtpu: 0.0.40
codegen_flags: <defaults>
</compile_context>

<pallas_src>
import jax
import jax.numpy as jnp
from jax.experimental import pallas as pl
from jax.experimental.pallas import tpu as pltpu

LANES = 128
SUBLANES = 8
VREG_ELEMS = SUBLANES * LANES            # 1024 elements per (8,128) vreg tile
TARGET_BLOCK_BYTES = 2 * 1024 * 1024     # per-input block, in native dtype
NUM_SHARDS = 2                           # leading "parallel" axis (2 TCs on v7x)


def _make_rmse_kernel(rows: int, tile_rows: int, tiles_per_shard: int,
                      total_tiles: int, needs_mask: bool):
    """Build the reduction kernel closed over trace-time constants."""

    def kernel(yhat_ref, y_ref, out_ref):
        i = pl.program_id(1)             # reduction axis (last, "arbitrary")

        @pl.when(i == 0)
        def _():
            out_ref[...] = jnp.zeros_like(out_ref)

        # Upcast after the DMA so HBM traffic stays in the native dtype.
        d = yhat_ref[...].astype(jnp.float32) - y_ref[...].astype(jnp.float32)
        dd = d * d

        def fold(x):
            # (tile_rows, 128) -> (1, 8, 128): vreg-aligned groups summed on
            # the VPU (no cross-lane XLU work per step).
            return x.reshape(tile_rows // SUBLANES, SUBLANES, LANES).sum(axis=0)[None]

        if needs_mask:
            s = pl.program_id(0)
            t = s * tiles_per_shard + i  # intended global tile index

            @pl.when(t < total_tiles - 1)
            def _():
                out_ref[...] += fold(dd)

            @pl.when(t >= total_tiles - 1)
            def _():
                # Row-level mask: drops padded rows of a partial last tile and
                # zeroes duplicate "ghost" tiles (their DMA index is clamped).
                row = jax.lax.broadcasted_iota(jnp.int32, (tile_rows, LANES), 0)
                valid = (t * tile_rows + row) < rows
                out_ref[...] += fold(jnp.where(valid, dd, 0.0))
        else:
            out_ref[...] += fold(dd)

    return kernel


def rmse_loss(yhat: jax.Array, y: jax.Array) -> jax.Array:
    """Pallas equivalent of torch.sqrt(nn.MSELoss()(yhat, y)) -> scalar f32."""
    assert yhat.shape == y.shape, "yhat and y must have identical shapes"
    n_true = yhat.size
    assert n_true > 0, "RMSE of an empty tensor is undefined"

    yhat_flat = yhat.reshape(-1)
    y_flat = y.reshape(-1)

    # Minimal alignment: only pad (with zeros) when the element count is not a
    # multiple of one (8,128) vreg tile; the aligned case is a free reshape.
    # TODO(synk): the unaligned path still pays one extra pad copy; removing it
    # requires memory_space=pl.ANY + manual make_async_copy chunking of the
    # flat arrays (review option b) -- not done here to keep the kernel simple.
    n_pad = pl.cdiv(n_true, VREG_ELEMS) * VREG_ELEMS
    if n_pad != n_true:
        pad = n_pad - n_true
        yhat_flat = jnp.pad(yhat_flat, (0, pad))
        y_flat = jnp.pad(y_flat, (0, pad))

    rows = n_pad // LANES                               # multiple of 8

    # Dtype-aware block size: ~TARGET_BLOCK_BYTES per input in native dtype.
    itemsize = int(max(yhat.dtype.itemsize, y.dtype.itemsize))
    tile_rows = TARGET_BLOCK_BYTES // (LANES * itemsize)
    tile_rows = max(SUBLANES, (min(tile_rows, rows) // SUBLANES) * SUBLANES)

    total_tiles = pl.cdiv(rows, tile_rows)
    num_shards = NUM_SHARDS if total_tiles >= NUM_SHARDS else 1
    tiles_per_shard = pl.cdiv(total_tiles, num_shards)
    has_ghost = num_shards * tiles_per_shard != total_tiles
    needs_mask = has_ghost or (rows % tile_rows != 0)

    if has_ghost:
        # Clamp ghost tiles (odd tile count split over shards) onto the last
        # real block; their contribution is zeroed by the in-kernel row mask.
        def in_idx(s, i):
            return (jnp.minimum(s * tiles_per_shard + i, total_tiles - 1), 0)
    else:
        def in_idx(s, i):
            return (s * tiles_per_shard + i, 0)

    yhat2d = yhat_flat.reshape(rows, LANES)
    y2d = y_flat.reshape(rows, LANES)

    kernel = _make_rmse_kernel(rows, tile_rows, tiles_per_shard, total_tiles,
                               needs_mask)

    # VMEM budget: 2 inputs x 2 pipeline buffers (native dtype) + room for the
    # f32 intermediates of one block + slack.  Stays < 64 MiB (v7x physical).
    block_bytes = tile_rows * LANES * itemsize
    f32_block_bytes = tile_rows * LANES * 4
    vmem_limit = int(4 * block_bytes + 8 * f32_block_bytes + (4 << 20))

    partials = pl.pallas_call(
        kernel,
        out_shape=jax.ShapeDtypeStruct((num_shards, SUBLANES, LANES),
                                       jnp.float32),
        grid_spec=pltpu.PrefetchScalarGridSpec(
            num_scalar_prefetch=0,
            grid=(num_shards, tiles_per_shard),
            in_specs=[
                pl.BlockSpec((tile_rows, LANES), in_idx),
                pl.BlockSpec((tile_rows, LANES), in_idx),
            ],
            out_specs=pl.BlockSpec((1, SUBLANES, LANES),
                                   lambda s, i: (s, 0, 0)),
        ),
        compiler_params=pltpu.CompilerParams(
            dimension_semantics=("parallel", "arbitrary"),
            vmem_limit_bytes=vmem_limit,
        ),
    )(yhat2d, y2d)

    total = jnp.sum(partials, dtype=jnp.float32)
    return jnp.sqrt(total * jnp.float32(1.0 / n_true))


if __name__ == "__main__":
    key = jax.random.PRNGKey(0)
    k1, k2, k3, k4, k5, k6, k7, k8 = jax.random.split(key, 8)

    # 1) Small NCHW-style shape (lane-aligned, single tile, single shard).
    yhat = jax.random.normal(k1, (2, 4, 16, 16), dtype=jnp.float32)
    y = jax.random.normal(k2, (2, 4, 16, 16), dtype=jnp.float32)
    loss = rmse_loss(yhat, y)
    jax.block_until_ready(loss)
    ref = jnp.sqrt(jnp.mean((yhat - y) ** 2))
    assert jnp.allclose(loss, ref, rtol=1e-5, atol=1e-6), (loss, ref)

    # 2) Unaligned element count (exercises the minimal zero-pad path).
    yhat_u = jax.random.normal(k3, (3, 5, 7, 11), dtype=jnp.float32)
    y_u = jax.random.normal(k4, (3, 5, 7, 11), dtype=jnp.float32)
    loss_u = rmse_loss(yhat_u, y_u)
    jax.block_until_ready(loss_u)
    ref_u = jnp.sqrt(jnp.mean((yhat_u - y_u) ** 2))
    assert jnp.allclose(loss_u, ref_u, rtol=1e-5, atol=1e-6), (loss_u, ref_u)

    # 3) Multi-tile, 2-shard f32 case with a partial last tile AND a ghost tile
    #    (odd tile count -> clamped index map + row mask).
    yhat_m = jax.random.normal(k5, (8200, 128), dtype=jnp.float32)
    y_m = jax.random.normal(k6, (8200, 128), dtype=jnp.float32)
    loss_m = rmse_loss(yhat_m, y_m)
    jax.block_until_ready(loss_m)
    ref_m = jnp.sqrt(jnp.mean((yhat_m - y_m) ** 2))
    assert jnp.allclose(loss_m, ref_m, rtol=1e-4, atol=1e-6), (loss_m, ref_m)

    # 4) bf16 inputs (dtype-aware tiling, native-dtype DMA, partial last tile).
    yhat_b = jax.random.normal(k7, (5000, 256), dtype=jnp.bfloat16)
    y_b = jax.random.normal(k8, (5000, 256), dtype=jnp.bfloat16)
    loss_b = rmse_loss(yhat_b, y_b)
    jax.block_until_ready(loss_b)
    ref_b = jnp.sqrt(jnp.mean(
        (yhat_b.astype(jnp.float32) - y_b.astype(jnp.float32)) ** 2))
    assert jnp.allclose(loss_b, ref_b, rtol=1e-4, atol=1e-6), (loss_b, ref_b)

    print("KERNEL_OK")
</pallas_src>

<mosaic_0001>
module attributes {stable_mosaic.version = 11 : i64} {
  func.func @kernel(%arg0: i32, %arg1: i32, %arg2: memref<16x128xf32, #tpu.memory_space<vmem>>, %arg3: memref<16x128xf32, #tpu.memory_space<vmem>>, %arg4: memref<1x8x128xf32, #tpu.memory_space<vmem>>) attributes {dimension_semantics = [#tpu.dimension_semantics<parallel>, #tpu.dimension_semantics<arbitrary>], iteration_bounds = array<i64: 1, 1>, scalar_prefetch = 0 : i64, scratch_operands = 0 : i64, tpu.core_type = #tpu.core_type<tc>, window_params = [{transform_indices = @transform_0, window_bounds = array<i64: 16, 128>}, {transform_indices = @transform_1, window_bounds = array<i64: 16, 128>}, {transform_indices = @transform_2, window_bounds = array<i64: 1, 8, 128>}]} {
    %c0_i32 = arith.constant 0 : i32
    %0 = arith.cmpi eq, %arg1, %c0_i32 : i32
    %1 = arith.extui %0 : i1 to i32
    %c0_i32_0 = arith.constant 0 : i32
    %2 = arith.cmpi ne, %1, %c0_i32_0 : i32
    scf.if %2 {
      %cst_10 = arith.constant 0.000000e+00 : f32
      %13 = vector.broadcast %cst_10 : f32 to vector<1x8x128xf32>
      %c0_11 = arith.constant 0 : index
      %c0_12 = arith.constant 0 : index
      %c0_13 = arith.constant 0 : index
      %14 = vector.load %arg4[%c0_11, %c0_12, %c0_13] : memref<1x8x128xf32, #tpu.memory_space<vmem>>, vector<1x8x128xf32>
      tpu.vector_store %arg4[%c0_11, %c0_12, %c0_13], %13 {strides = array<i32>} : memref<1x8x128xf32, #tpu.memory_space<vmem>>, vector<1x8x128xf32>,
    } else {
    }
    %c0 = arith.constant 0 : index
    %c0_1 = arith.constant 0 : index
    %3 = vector.load %arg2[%c0, %c0_1] : memref<16x128xf32, #tpu.memory_space<vmem>>, vector<16x128xf32>
    %c0_2 = arith.constant 0 : index
    %c0_3 = arith.constant 0 : index
    %4 = vector.load %arg3[%c0_2, %c0_3] : memref<16x128xf32, #tpu.memory_space<vmem>>, vector<16x128xf32>
    %5 = arith.subf %3, %4 : vector<16x128xf32>
    %6 = arith.mulf %5, %5 : vector<16x128xf32>
    %c0_4 = arith.constant 0 : index
    %c0_5 = arith.constant 0 : index
    %c0_6 = arith.constant 0 : index
    %7 = vector.load %arg4[%c0_4, %c0_5, %c0_6] : memref<1x8x128xf32, #tpu.memory_space<vmem>>, vector<1x8x128xf32>
    %8 = vector.shape_cast %6 : vector<16x128xf32> to vector<2x8x128xf32>
    %cst = arith.constant dense<0.000000e+00> : vector<8x128xf32>
    %9 = vector.multi_reduction <add>, %8, %cst [0] : vector<2x8x128xf32> to vector<8x128xf32>
    %10 = vector.shape_cast %9 : vector<8x128xf32> to vector<1x8x128xf32>
    %11 = arith.addf %7, %10 : vector<1x8x128xf32>
    %c0_7 = arith.constant 0 : index
    %c0_8 = arith.constant 0 : index
    %c0_9 = arith.constant 0 : index
    %12 = vector.load %arg4[%c0_7, %c0_8, %c0_9] : memref<1x8x128xf32, #tpu.memory_space<vmem>>, vector<1x8x128xf32>
    tpu.vector_store %arg4[%c0_7, %c0_8, %c0_9], %11 {strides = array<i32>} : memref<1x8x128xf32, #tpu.memory_space<vmem>>, vector<1x8x128xf32>,
    return
  }
  func.func @transform_0(%arg0: i32, %arg1: i32) -> (i32, i32) {
    %c1_i32 = arith.constant 1 : i32
    %0 = arith.muli %arg0, %c1_i32 : i32
    %1 = arith.addi %0, %arg1 : i32
    %c0_i32 = arith.constant 0 : i32
    %c0_i32_0 = arith.constant 0 : i32
    return %1, %c0_i32 : i32, i32
  }
  func.func @transform_1(%arg0: i32, %arg1: i32) -> (i32, i32) {
    %c1_i32 = arith.constant 1 : i32
    %0 = arith.muli %arg0, %c1_i32 : i32
    %1 = arith.addi %0, %arg1 : i32
    %c0_i32 = arith.constant 0 : i32
    %c0_i32_0 = arith.constant 0 : i32
    return %1, %c0_i32 : i32, i32
  }
  func.func @transform_2(%arg0: i32, %arg1: i32) -> (i32, i32, i32) {
    %c0_i32 = arith.constant 0 : i32
    %c0_i32_0 = arith.constant 0 : i32
    %c0_i32_1 = arith.constant 0 : i32
    return %arg0, %c0_i32, %c0_i32_0 : i32, i32, i32
  }
}

</mosaic_0001>

<bundles_post_ra>
// kernel: tpu_custom_call.1
= control target key start
LH: loop header
LB: loop body
LE: loop exit
PB: predicated region body
PF: predicated region fallthrough
CT: control target
= control target key end

     0   :  { %7 = vsyncpa [#allocation3], 0  ;;  %s186_s0 = inlined_call_operand.hbm [shape: f32[16,128], index: 0, kind: input, shape index: {}]   ;;  %s187_s1 = inlined_call_operand.hbm [shape: f32[16,128], index: 1, kind: input, shape index: {}]   ;;  %s188_s2 = inlined_call_operand.hbm [shape: f32[1,8,128], index: 2, kind: output, shape index: {}]  }
   0x1   :  { %8 = vsyncpa [#allocation6], 0 }
   0x2   :  { %9 = vsyncpa [#allocation4], 0  ;;  %s157_s9 = smov [#allocation2]  }
   0x3   :  { %s19_s10 = sshll.u32 %s157_s9, 4  ;;  %s20_s10 = int_to_ptr.vmem [resolvable:$true] %s19_s10 }
   0x4   :  { %s99_s11 = scalar_lea.vmem %s20_s10, 256  ;;  %p104_p1 = scmp.lt.s32.totalorder %s20_s10, %s20_s10 }
   0x5   :  { %p100_p0 = scmp.ne.s32.totalorder %s20_s10, %s99_s11  ;;  %p105_p2 = scmp.lt.s32.totalorder %s99_s11, %s99_s11 }
   0x7   :  { %p106_p3 = por %p105_p2, %p104_p1 }
   0x9   :  { %p107_p4 = pnand %p106_p3, %p100_p0 }
   0xb   :  { %110 = shalt.err (!%p107_p4)
}
   0xc   :  { %s158_s12 = smov 128   ;;  %s159_s13 = smov 8  }
   0xd   :  { %25 = dma.hbm_to_vmem [thread:$0]  %s186_s0, 256, %s20_s10, [#allocation3], %s158_s12, %s158_s12, %s159_s13  }
   0xe   :  { %s160_s16 = smov [#allocation5]  }
   0xf   :  { %s35_s17 = sshll.u32 %s160_s16, 4  ;;  %s36_s17 = int_to_ptr.vmem [resolvable:$true] %s35_s17 }
  0x10   :  { %s119_s18 = scalar_lea.vmem %s36_s17, 256  ;;  %p124_p6 = scmp.lt.s32.totalorder %s36_s17, %s36_s17 }
  0x11   :  { %p120_p5 = scmp.ne.s32.totalorder %s36_s17, %s119_s18  ;;  %p125_p7 = scmp.lt.s32.totalorder %s119_s18, %s119_s18 }
  0x13   :  { %p126_p8 = por %p125_p7, %p124_p6 }
  0x15   :  { %p127_p9 = pnand %p126_p8, %p120_p5 }
  0x17   :  { %130 = shalt.err (!%p127_p9)
}
  0x18   :  { %41 = dma.hbm_to_vmem [thread:$0]  %s187_s1, 256, %s36_s17, [#allocation6], %s158_s12, %s158_s12, %s159_s13  }
  0x19   :  { %151 = dma.done.wait [#allocation3], 256  }
  0x1a   :  { %152 = vsyncadd [#allocation3], 4294967040 }
  0x1b   :  { %153 = dma.done.wait [#allocation6], 256  }
  0x1c   :  { %154 = vsyncadd [#allocation6], 4294967040  ;;  %v57_v0 = vld [vmem:[#allocation2] sm:$0xff]  ;;  %v58_v1 = vld [vmem:[#allocation2 + $0x8] sm:$0xff]  ;;  %s161_s0 = smov [#allocation7]  }
  0x1d   :  { %v59_v2 = vld [vmem:[#allocation5] sm:$0xff]  ;;  %v60_v3 = vld [vmem:[#allocation5 + $0x8] sm:$0xff]  ;;  %s75_s21 = sshll.u32 %s161_s0, 4  ;;  %s76_s21 = int_to_ptr.vmem [resolvable:$true] %s75_s21 }
  0x1e   :  { %v61_v4 = vsub.f32 %v57_v0, %v59_v2  ;;  %v62_v5 = vsub.f32 %v58_v1, %v60_v3  ;;  %s131_s22 = scalar_lea.vmem %s76_s21, 128  ;;  %p136_p11 = scmp.lt.s32.totalorder %s76_s21, %s76_s21 }
  0x1f   :  { %p132_p10 = scmp.ne.s32.totalorder %s76_s21, %s131_s22  ;;  %p137_p12 = scmp.lt.s32.totalorder %s131_s22, %s131_s22 }
  0x20   :  { %v63_v6 = vmul.f32 %v61_v4, %v61_v4  ;;  %v64_v7 = vmul.f32 %v62_v5, %v62_v5 }
  0x21   :  { %p138_p13 = por %p137_p12, %p136_p11 }
  0x22   :  { %v66_v8 = vadd.f32 %v64_v7, %v63_v6 }
  0x23   :  { %p139_p0 = pnand %p138_p13, %p132_p10 }
  0x24   :  { %68 = vst [vmem:[#allocation7] sm:$0xff] %v66_v8 }
  0x25   :  { %142 = shalt.err (!%p139_p0)
}
  0x26   :  { %78 = dma.vmem_to_hbm [thread:$0]  %s76_s21, 128, %s188_s2, [#allocation4]  }
  0x27   :  { %155 = dma.done.wait [#allocation4], 128  }
  0x28   :  { %156 = vsyncadd [#allocation4], 4294967168 }
  0x29   :  { %82 = vsyncpa [#allocation3], 1 }
  0x2a   :  { %83 = vsyncpa [#allocation6], 1 }
  0x2b   :  { %84 = vsyncpa [#allocation4], 1 }

</bundles_post_ra>
